<compile_context>
chip_gen: v6e
topology: v6e:2x2x1
jax: 0.10.0
libtpu: 0.0.40
codegen_flags: <defaults>
</compile_context>

<pallas_src>
import functools
import math

import jax
import jax.numpy as jnp
from jax import lax
from jax.experimental import pallas as pl
from jax.experimental.pallas import tpu as pltpu


# --------------------------------------------------------------------------------------
# In-kernel helpers
# --------------------------------------------------------------------------------------
def _gate_update(gates, c, Hp):
    # Gate column order is [i, f, o, g] (wrapper-permuted from PyTorch's [i, f, g, o]),
    # so sigmoid runs over the first 3H columns and tanh over the last H columns only.
    sig = jax.nn.sigmoid(gates[:, : 3 * Hp])
    g = jnp.tanh(gates[:, 3 * Hp:])
    i = sig[:, :Hp]
    f = sig[:, Hp: 2 * Hp]
    o = sig[:, 2 * Hp:]
    c_new = f * c + i * g
    h_new = o * jnp.tanh(c_new)
    return h_new, c_new


def encoder_kernel(x_ref, w_ih_ref, w_hh_ref, b_ref, hend_ref,
                   h_sc, c_sc, xw_sc, *, Tc, Bp, Hp, unroll):
    # Grid axis = time chunks ("arbitrary"); h/c carried in persistent VMEM scratch.
    @pl.when(pl.program_id(0) == 0)
    def _():
        h_sc[...] = jnp.zeros_like(h_sc)
        c_sc[...] = jnp.zeros_like(c_sc)

    w_ih = w_ih_ref[...]
    w_hh = w_hh_ref[...]

    # Chunk input projection hoisted out of the recurrence: one batched MXU call,
    # summed biases folded in.
    xw_sc[...] = (
        jnp.dot(x_ref[...].astype(w_ih.dtype), w_ih,
                preferred_element_type=jnp.float32)
        + b_ref[...]
    )

    def body(t, carry):
        h, c = carry
        row = pl.multiple_of(t * Bp, 8)
        gates = xw_sc[pl.ds(row, Bp), :] + jnp.dot(
            h.astype(w_hh.dtype), w_hh, preferred_element_type=jnp.float32)
        return _gate_update(gates, c, Hp)

    h, c = lax.fori_loop(0, Tc, body, (h_sc[...], c_sc[...]), unroll=unroll)
    h_sc[...] = h
    c_sc[...] = c
    hend_ref[...] = h          # tiny (Bp, Hp) store; last chunk's value is final


def decoder_kernel(hend_ref, w_mean_ref, b_mean_ref, w_l2h_ref, b_l2h_ref,
                   w_hh_ref, b_ref, w_out_ref, b_out_ref, out_ref,
                   h_sc, c_sc, hdec_sc, *, Tc, Bp, Hp, unroll):
    # First chunk: hidden -> mean -> decoder initial hidden (eval mode: mean, no eps).
    @pl.when(pl.program_id(0) == 0)
    def _():
        w_mean = w_mean_ref[...]
        mean = (jnp.dot(hend_ref[...].astype(w_mean.dtype), w_mean,
                        preferred_element_type=jnp.float32)
                + b_mean_ref[...])
        w_l2h = w_l2h_ref[...]
        h_sc[...] = (jnp.dot(mean.astype(w_l2h.dtype), w_l2h,
                             preferred_element_type=jnp.float32)
                     + b_l2h_ref[...])
        c_sc[...] = jnp.zeros_like(c_sc)

    w_hh = w_hh_ref[...]
    b_d = b_ref[...]

    # Decoder LSTM input is torch.zeros(T, B, 1) -> x @ W_ih^T contributes 0; only
    # W_hh, summed biases and the carried state matter.
    def body(t, carry):
        h, c = carry
        gates = b_d + jnp.dot(h.astype(w_hh.dtype), w_hh,
                              preferred_element_type=jnp.float32)
        h, c = _gate_update(gates, c, Hp)
        row = pl.multiple_of(t * Bp, 8)
        hdec_sc[pl.ds(row, Bp), :] = h
        return (h, c)

    h, c = lax.fori_loop(0, Tc, body, (h_sc[...], c_sc[...]), unroll=unroll)
    h_sc[...] = h
    c_sc[...] = c

    # Per-chunk output projection: one batched MXU call + one lane-dense store.
    w_out = w_out_ref[...]
    out_ref[...] = (
        jnp.dot(hdec_sc[...].astype(w_out.dtype), w_out,
                preferred_element_type=jnp.float32)
        + b_out_ref[...]
    )


# --------------------------------------------------------------------------------------
# Wrapper-side weight preparation (layout plumbing only)
# --------------------------------------------------------------------------------------
def _round_up(n, m):
    return ((n + m - 1) // m) * m


def _pad2(m, rows, cols, dtype=None):
    out = jnp.pad(m, ((0, rows - m.shape[0]), (0, cols - m.shape[1])))
    return out.astype(dtype) if dtype is not None else out


def _lstm_gate_w(w, H, Hp, dtype):
    # w: (4H, K) PyTorch LSTM layout, gate row-blocks [i, f, g, o]
    # -> (K, 4Hp), gate column-blocks [i, f, o, g], each zero-padded H -> Hp.
    i, f, g, o = (w[k * H:(k + 1) * H] for k in range(4))
    pad = lambda blk: jnp.pad(blk, ((0, Hp - H), (0, 0)))
    return jnp.concatenate([pad(i), pad(f), pad(o), pad(g)], axis=0).T.astype(dtype)


def _lstm_gate_b(b, H, Hp):
    # b: (1, 4H) summed bias -> (1, 4Hp), reordered [i, f, o, g], zero-padded.
    i, f, g, o = (b[:, k * H:(k + 1) * H] for k in range(4))
    pad = lambda blk: jnp.pad(blk, ((0, 0), (0, Hp - H)))
    return jnp.concatenate([pad(i), pad(f), pad(o), pad(g)], axis=1)


def _vmem_limit(shaped):
    total = 0
    for shape, dtype in shaped:
        total += int(math.prod(shape)) * jnp.dtype(dtype).itemsize
    # 2x for double-buffered I/O blocks + headroom; clamp above the 16/32 MiB scoped
    # default and below v7x's 64 MiB physical VMEM.
    return int(max(32 << 20, min(2 * total + (4 << 20), 64 << 20)))


def latent_transformer_forward(x, params, *, time_chunk=8, weights_dtype=jnp.float32):
    T, B, Din = x.shape
    H = params["w_hh_e"].shape[1]
    L = params["w_mean"].shape[0]
    Dout = params["w_out"].shape[0]

    # Padded sizes: batch to sublane multiple, hidden/latent/output to lane multiples.
    # Padded hidden/latent units stay exactly 0 through the whole network (zero rows &
    # cols in the padded weights, zero biases, tanh(0)=0 -> c=h=0), so real outputs are
    # bit-identical; padded batch rows are sliced off at the end.
    Bp = _round_up(B, 8)
    Hp = _round_up(H, 128)
    Lp = _round_up(L, 128)
    Doutp = _round_up(Dout, 128)

    if Bp != B:
        x = jnp.pad(x, ((0, 0), (0, Bp - B), (0, 0)))
    x2d = x.reshape(T * Bp, Din)

    # ---- weight prep: gate reorder to [i,f,o,g], zero-pad, pre-transpose ----
    w_ih_e = _lstm_gate_w(params["w_ih_e"], H, Hp, weights_dtype)              # (Din, 4Hp)
    w_hh_e = _pad2(_lstm_gate_w(params["w_hh_e"], H, Hp, jnp.float32),
                   Hp, 4 * Hp, weights_dtype)                                  # (Hp, 4Hp)
    b_e = _lstm_gate_b(params["b_e"], H, Hp)                                   # (1, 4Hp)
    w_mean = _pad2(params["w_mean"].T, Hp, Lp, weights_dtype)                  # (Hp, Lp)
    b_mean = _pad2(params["b_mean"], 1, Lp)                                    # (1, Lp)
    w_l2h = _pad2(params["w_l2h"].T, Lp, Hp, weights_dtype)                    # (Lp, Hp)
    b_l2h = _pad2(params["b_l2h"], 1, Hp)                                      # (1, Hp)
    w_hh_d = _pad2(_lstm_gate_w(params["w_hh_d"], H, Hp, jnp.float32),
                   Hp, 4 * Hp, weights_dtype)                                  # (Hp, 4Hp)
    b_d = _lstm_gate_b(params["b_d"], H, Hp)                                   # (1, 4Hp)
    w_out = _pad2(params["w_out"].T, Hp, Doutp, weights_dtype)                 # (Hp, Doutp)
    b_out = _pad2(params["b_out"], 1, Doutp)                                   # (1, Doutp)

    # ---- time chunking ----
    Tc = math.gcd(T, max(1, int(time_chunk)))
    n_chunks = T // Tc
    rows_c = Tc * Bp
    unroll = Tc if Tc <= 8 else 8   # partial unroll for long recurrences

    # ---------------------------- encoder pallas_call ----------------------------
    enc_args = (x2d, w_ih_e, w_hh_e, b_e)
    enc_limit = _vmem_limit([
        ((rows_c, Din), x2d.dtype),
        (w_ih_e.shape, w_ih_e.dtype), (w_hh_e.shape, w_hh_e.dtype),
        (b_e.shape, b_e.dtype),
        ((Bp, Hp), jnp.float32),                   # h_end output
        ((Bp, Hp), jnp.float32), ((Bp, Hp), jnp.float32),
        ((rows_c, 4 * Hp), jnp.float32),           # scratch
    ])
    h_end = pl.pallas_call(
        functools.partial(encoder_kernel, Tc=Tc, Bp=Bp, Hp=Hp, unroll=unroll),
        out_shape=jax.ShapeDtypeStruct((Bp, Hp), jnp.float32),
        grid_spec=pltpu.PrefetchScalarGridSpec(
            num_scalar_prefetch=0,
            grid=(n_chunks,),
            in_specs=[
                pl.BlockSpec((rows_c, Din), lambda t: (t, 0)),   # streamed x chunks
                pl.BlockSpec(w_ih_e.shape, lambda t: (0, 0)),
                pl.BlockSpec(w_hh_e.shape, lambda t: (0, 0)),
                pl.BlockSpec(b_e.shape, lambda t: (0, 0)),
            ],
            out_specs=pl.BlockSpec((Bp, Hp), lambda t: (0, 0)),
            scratch_shapes=[
                pltpu.VMEM((Bp, Hp), jnp.float32),       # h carry
                pltpu.VMEM((Bp, Hp), jnp.float32),       # c carry
                pltpu.VMEM((rows_c, 4 * Hp), jnp.float32),  # chunk input projection
            ],
        ),
        compiler_params=pltpu.CompilerParams(
            dimension_semantics=("arbitrary",),
            vmem_limit_bytes=enc_limit,
        ),
    )(*enc_args)

    # ---------------------------- decoder pallas_call ----------------------------
    dec_args = (h_end, w_mean, b_mean, w_l2h, b_l2h, w_hh_d, b_d, w_out, b_out)
    dec_limit = _vmem_limit(
        [(a.shape, a.dtype) for a in dec_args]
        + [((rows_c, Doutp), jnp.float32),          # output chunk
           ((Bp, Hp), jnp.float32), ((Bp, Hp), jnp.float32),
           ((rows_c, Hp), jnp.float32)]             # scratch
    )
    out2d = pl.pallas_call(
        functools.partial(decoder_kernel, Tc=Tc, Bp=Bp, Hp=Hp, unroll=unroll),
        out_shape=jax.ShapeDtypeStruct((T * Bp, Doutp), jnp.float32),
        grid_spec=pltpu.PrefetchScalarGridSpec(
            num_scalar_prefetch=0,
            grid=(n_chunks,),
            in_specs=[pl.BlockSpec(a.shape, lambda t: (0, 0)) for a in dec_args],
            out_specs=pl.BlockSpec((rows_c, Doutp), lambda t: (t, 0)),
            scratch_shapes=[
                pltpu.VMEM((Bp, Hp), jnp.float32),       # h carry
                pltpu.VMEM((Bp, Hp), jnp.float32),       # c carry
                pltpu.VMEM((rows_c, Hp), jnp.float32),   # decoder hidden states (chunk)
            ],
        ),
        compiler_params=pltpu.CompilerParams(
            dimension_semantics=("arbitrary",),
            vmem_limit_bytes=dec_limit,
        ),
    )(*dec_args)

    return out2d.reshape(T, Bp, Doutp)[:, :B, :Dout]


# ---------------- deterministic parameter construction ----------------
def init_params(key, seq_length, input_dim, hidden_dim, latent_dim):
    del seq_length
    ks = jax.random.split(key, 12)

    def uniform(k, shape, bound):
        return jax.random.uniform(k, shape, jnp.float32, -bound, bound)

    def xavier(k, shape):  # torch.nn.init.xavier_uniform_
        fan_out, fan_in = shape
        bound = (6.0 / (fan_in + fan_out)) ** 0.5
        return uniform(k, shape, bound)

    lstm_b = 1.0 / (hidden_dim ** 0.5)       # PyTorch LSTM default init bound
    p = {}
    # Encoder LSTM(input_dim -> hidden)
    p["w_ih_e"] = uniform(ks[0], (4 * hidden_dim, input_dim), lstm_b)
    p["w_hh_e"] = uniform(ks[1], (4 * hidden_dim, hidden_dim), lstm_b)
    p["b_e"] = (uniform(ks[2], (1, 4 * hidden_dim), lstm_b)
                + uniform(ks[3], (1, 4 * hidden_dim), lstm_b))  # bias_ih + bias_hh
    # hidden_to_mean (xavier weight, default-uniform bias)
    p["w_mean"] = xavier(ks[4], (latent_dim, hidden_dim))
    p["b_mean"] = uniform(ks[5], (1, latent_dim), 1.0 / (hidden_dim ** 0.5))
    # Decoder latent_to_hidden
    p["w_l2h"] = xavier(ks[6], (hidden_dim, latent_dim))
    p["b_l2h"] = uniform(ks[7], (1, hidden_dim), 1.0 / (latent_dim ** 0.5))
    # Decoder LSTM(1 -> hidden); weight_ih is irrelevant (zero input), biases kept
    p["w_hh_d"] = uniform(ks[8], (4 * hidden_dim, hidden_dim), lstm_b)
    p["b_d"] = (uniform(ks[9], (1, 4 * hidden_dim), lstm_b)
                + uniform(ks[10], (1, 4 * hidden_dim), lstm_b))
    # hidden_to_output
    p["w_out"] = xavier(ks[11], (input_dim, hidden_dim))
    p["b_out"] = jnp.zeros((1, input_dim), jnp.float32)  # deterministic bias
    return p


# ---------------- pure-JAX reference for validation ----------------
def reference_forward(x, p):
    T, B, _ = x.shape
    H = p["w_hh_e"].shape[1]

    def cell(x_t, h, c, w_ih, w_hh, b):
        gates = b + h @ w_hh.T
        if x_t is not None:
            gates = gates + x_t @ w_ih.T
        i = jax.nn.sigmoid(gates[:, :H])
        f = jax.nn.sigmoid(gates[:, H:2 * H])
        g = jnp.tanh(gates[:, 2 * H:3 * H])
        o = jax.nn.sigmoid(gates[:, 3 * H:])
        c = f * c + i * g
        h = o * jnp.tanh(c)
        return h, c

    h = jnp.zeros((B, H), jnp.float32)
    c = jnp.zeros((B, H), jnp.float32)
    for t in range(T):
        h, c = cell(x[t], h, c, p["w_ih_e"], p["w_hh_e"], p["b_e"])
    mean = h @ p["w_mean"].T + p["b_mean"]
    hd = mean @ p["w_l2h"].T + p["b_l2h"]
    cd = jnp.zeros((B, H), jnp.float32)
    outs = []
    for _ in range(T):
        hd, cd = cell(None, hd, cd, None, p["w_hh_d"], p["b_d"])
        outs.append(hd @ p["w_out"].T + p["b_out"])
    return jnp.stack(outs, axis=0)


if __name__ == "__main__":
    seq_length, batch, input_dim = 8, 4, 4
    hidden_dim, latent_dim = 32, 16

    key = jax.random.PRNGKey(0)
    kx, kp = jax.random.split(key)
    # x in (seq, batch, features) layout, as fed to the PyTorch module after permute(1,0,2)
    x = jax.random.normal(kx, (seq_length, batch, input_dim), jnp.float32)
    params = init_params(kp, seq_length, input_dim, hidden_dim, latent_dim)

    # time_chunk=4 -> grid=(2,) so the carried-state (h/c in VMEM scratch) path is exercised.
    # For v6e/v7x throughput, pass weights_dtype=jnp.bfloat16 (relax the tolerance below).
    out = latent_transformer_forward(x, params, time_chunk=4,
                                     weights_dtype=jnp.float32)
    out = jax.block_until_ready(out)

    ref = reference_forward(x, params)
    assert out.shape == (seq_length, batch, input_dim)
    assert jnp.allclose(out, ref, rtol=1e-5, atol=1e-5), "mismatch vs JAX reference"

    print("KERNEL_OK")
</pallas_src>

<mosaic_0001>
module attributes {stable_mosaic.version = 11 : i64} {
  func.func @encoder_kernel(%arg0: i32, %arg1: memref<32x4xf32, #tpu.memory_space<vmem>>, %arg2: memref<4x512xf32, #tpu.memory_space<vmem>>, %arg3: memref<128x512xf32, #tpu.memory_space<vmem>>, %arg4: memref<1x512xf32, #tpu.memory_space<vmem>>, %arg5: memref<8x128xf32, #tpu.memory_space<vmem>>, %arg6: memref<8x128xf32, #tpu.memory_space<vmem>>, %arg7: memref<8x128xf32, #tpu.memory_space<vmem>>, %arg8: memref<32x512xf32, #tpu.memory_space<vmem>>) attributes {dimension_semantics = [#tpu.dimension_semantics<arbitrary>], iteration_bounds = array<i64: 2>, scalar_prefetch = 0 : i64, scratch_operands = 3 : i64, tpu.core_type = #tpu.core_type<tc>, window_params = [{transform_indices = @transform_0, window_bounds = array<i64: 32, 4>}, {pipeline_mode = #tpu.pipeline_mode<synchronous>, transform_indices = @transform_1, window_bounds = array<i64: 4, 512>}, {pipeline_mode = #tpu.pipeline_mode<synchronous>, transform_indices = @transform_2, window_bounds = array<i64: 128, 512>}, {pipeline_mode = #tpu.pipeline_mode<synchronous>, transform_indices = @transform_3, window_bounds = array<i64: 1, 512>}, {pipeline_mode = #tpu.pipeline_mode<synchronous>, transform_indices = @transform_4, window_bounds = array<i64: 8, 128>}]} {
    %c0_i32 = arith.constant 0 : i32
    %0 = arith.cmpi eq, %arg0, %c0_i32 : i32
    %1 = arith.extui %0 : i1 to i32
    %c0_i32_0 = arith.constant 0 : i32
    %2 = arith.cmpi ne, %1, %c0_i32_0 : i32
    scf.if %2 {
      %cst_36 = arith.constant 0.000000e+00 : f32
      %104 = vector.broadcast %cst_36 : f32 to vector<8x128xf32>
      %c0_37 = arith.constant 0 : index
      %c0_38 = arith.constant 0 : index
      %105 = vector.load %arg6[%c0_37, %c0_38] : memref<8x128xf32, #tpu.memory_space<vmem>>, vector<8x128xf32>
      tpu.vector_store %arg6[%c0_37, %c0_38], %104 {strides = array<i32>} : memref<8x128xf32, #tpu.memory_space<vmem>>, vector<8x128xf32>,
      %cst_39 = arith.constant 0.000000e+00 : f32
      %106 = vector.broadcast %cst_39 : f32 to vector<8x128xf32>
      %c0_40 = arith.constant 0 : index
      %c0_41 = arith.constant 0 : index
      %107 = vector.load %arg7[%c0_40, %c0_41] : memref<8x128xf32, #tpu.memory_space<vmem>>, vector<8x128xf32>
      tpu.vector_store %arg7[%c0_40, %c0_41], %106 {strides = array<i32>} : memref<8x128xf32, #tpu.memory_space<vmem>>, vector<8x128xf32>,
    } else {
    }
    %c0 = arith.constant 0 : index
    %c0_1 = arith.constant 0 : index
    %3 = vector.load %arg2[%c0, %c0_1] : memref<4x512xf32, #tpu.memory_space<vmem>>, vector<4x512xf32>
    %c0_2 = arith.constant 0 : index
    %c0_3 = arith.constant 0 : index
    %4 = vector.load %arg3[%c0_2, %c0_3] : memref<128x512xf32, #tpu.memory_space<vmem>>, vector<128x512xf32>
    %c0_4 = arith.constant 0 : index
    %c0_5 = arith.constant 0 : index
    %5 = vector.load %arg1[%c0_4, %c0_5] : memref<32x4xf32, #tpu.memory_space<vmem>>, vector<32x4xf32>
    %cst = arith.constant dense<0.000000e+00> : vector<32x512xf32>
    %6 = tpu.matmul %5, %3, %cst {dimension_numbers = #tpu.dot_dimension_numbers<[1], [0], [0], [1], [0, 0, 1, 1], [], []>} : vector<32x4xf32>, vector<4x512xf32>, vector<32x512xf32> -> vector<32x512xf32>
    %c0_6 = arith.constant 0 : index
    %c0_7 = arith.constant 0 : index
    %7 = vector.load %arg4[%c0_6, %c0_7] : memref<1x512xf32, #tpu.memory_space<vmem>>, vector<1x512xf32>
    %8 = vector.broadcast %7 : vector<1x512xf32> to vector<32x512xf32>
    %9 = arith.addf %6, %8 : vector<32x512xf32>
    %c0_8 = arith.constant 0 : index
    %c0_9 = arith.constant 0 : index
    %10 = vector.load %arg8[%c0_8, %c0_9] : memref<32x512xf32, #tpu.memory_space<vmem>>, vector<32x512xf32>
    tpu.vector_store %arg8[%c0_8, %c0_9], %9 {strides = array<i32>} : memref<32x512xf32, #tpu.memory_space<vmem>>, vector<32x512xf32>,
    %c0_10 = arith.constant 0 : index
    %c0_11 = arith.constant 0 : index
    %11 = vector.load %arg6[%c0_10, %c0_11] : memref<8x128xf32, #tpu.memory_space<vmem>>, vector<8x128xf32>
    %c0_12 = arith.constant 0 : index
    %c0_13 = arith.constant 0 : index
    %12 = vector.load %arg7[%c0_12, %c0_13] : memref<8x128xf32, #tpu.memory_space<vmem>>, vector<8x128xf32>
    %c0_i32_14 = arith.constant 0 : i32
    %c8_i32 = arith.constant 8 : i32
    %13 = arith.muli %c0_i32_14, %c8_i32 : i32
    %14 = tpu.assume_multiple %13, 8 : i32
    %15 = arith.index_cast %14 : i32 to index
    %c0_15 = arith.constant 0 : index
    %16 = vector.load %arg8[%15, %c0_15] : memref<32x512xf32, #tpu.memory_space<vmem>>, vector<8x512xf32>
    %cst_16 = arith.constant dense<0.000000e+00> : vector<8x512xf32>
    %17 = tpu.matmul %11, %4, %cst_16 {dimension_numbers = #tpu.dot_dimension_numbers<[1], [0], [0], [1], [0, 0, 1, 1], [], []>} : vector<8x128xf32>, vector<128x512xf32>, vector<8x512xf32> -> vector<8x512xf32>
    %18 = arith.addf %16, %17 : vector<8x512xf32>
    %19 = vector.extract_strided_slice %18 {offsets = [0, 0], sizes = [8, 384], strides = [1, 1]} : vector<8x512xf32> to vector<8x384xf32>
    %20 = arith.negf %19 : vector<8x384xf32>
    %21 = math.exp %20 : vector<8x384xf32>
    %cst_17 = arith.constant 1.000000e+00 : f32
    %22 = vector.broadcast %cst_17 : f32 to vector<8x384xf32>
    %23 = arith.addf %22, %21 : vector<8x384xf32>
    %24 = arith.divf %22, %23 : vector<8x384xf32>
    %25 = vector.extract_strided_slice %18 {offsets = [0, 384], sizes = [8, 128], strides = [1, 1]} : vector<8x512xf32> to vector<8x128xf32>
    %26 = math.tanh %25 : vector<8x128xf32>
    %27 = vector.extract_strided_slice %24 {offsets = [0, 0], sizes = [8, 128], strides = [1, 1]} : vector<8x384xf32> to vector<8x128xf32>
    %28 = vector.extract_strided_slice %24 {offsets = [0, 128], sizes = [8, 128], strides = [1, 1]} : vector<8x384xf32> to vector<8x128xf32>
    %29 = vector.extract_strided_slice %24 {offsets = [0, 256], sizes = [8, 128], strides = [1, 1]} : vector<8x384xf32> to vector<8x128xf32>
    %30 = arith.mulf %28, %12 : vector<8x128xf32>
    %31 = arith.mulf %27, %26 : vector<8x128xf32>
    %32 = arith.addf %30, %31 : vector<8x128xf32>
    %33 = math.tanh %32 : vector<8x128xf32>
    %34 = arith.mulf %29, %33 : vector<8x128xf32>
    %c1_i32 = arith.constant 1 : i32
    %c8_i32_18 = arith.constant 8 : i32
    %35 = arith.muli %c1_i32, %c8_i32_18 : i32
    %36 = tpu.assume_multiple %35, 8 : i32
    %37 = arith.index_cast %36 : i32 to index
    %c0_19 = arith.constant 0 : index
    %38 = vector.load %arg8[%37, %c0_19] : memref<32x512xf32, #tpu.memory_space<vmem>>, vector<8x512xf32>
    %cst_20 = arith.constant dense<0.000000e+00> : vector<8x512xf32>
    %39 = tpu.matmul %34, %4, %cst_20 {dimension_numbers = #tpu.dot_dimension_numbers<[1], [0], [0], [1], [0, 0, 1, 1], [], []>} : vector<8x128xf32>, vector<128x512xf32>, vector<8x512xf32> -> vector<8x512xf32>
    %40 = arith.addf %38, %39 : vector<8x512xf32>
    %41 = vector.extract_strided_slice %40 {offsets = [0, 0], sizes = [8, 384], strides = [1, 1]} : vector<8x512xf32> to vector<8x384xf32>
    %42 = arith.negf %41 : vector<8x384xf32>
    %43 = math.exp %42 : vector<8x384xf32>
    %cst_21 = arith.constant 1.000000e+00 : f32
    %44 = vector.broadcast %cst_21 : f32 to vector<8x384xf32>
    %45 = arith.addf %44, %43 : vector<8x384xf32>
    %46 = arith.divf %44, %45 : vector<8x384xf32>
    %47 = vector.extract_strided_slice %40 {offsets = [0, 384], sizes = [8, 128], strides = [1, 1]} : vector<8x512xf32> to vector<8x128xf32>
    %48 = math.tanh %47 : vector<8x128xf32>
    %49 = vector.extract_strided_slice %46 {offsets = [0, 0], sizes = [8, 128], strides = [1, 1]} : vector<8x384xf32> to vector<8x128xf32>
    %50 = vector.extract_strided_slice %46 {offsets = [0, 128], sizes = [8, 128], strides = [1, 1]} : vector<8x384xf32> to vector<8x128xf32>
    %51 = vector.extract_strided_slice %46 {offsets = [0, 256], sizes = [8, 128], strides = [1, 1]} : vector<8x384xf32> to vector<8x128xf32>
    %52 = arith.mulf %50, %32 : vector<8x128xf32>
    %53 = arith.mulf %49, %48 : vector<8x128xf32>
    %54 = arith.addf %52, %53 : vector<8x128xf32>
    %55 = math.tanh %54 : vector<8x128xf32>
    %56 = arith.mulf %51, %55 : vector<8x128xf32>
    %c2_i32 = arith.constant 2 : i32
    %c8_i32_22 = arith.constant 8 : i32
    %57 = arith.muli %c2_i32, %c8_i32_22 : i32
    %58 = tpu.assume_multiple %57, 8 : i32
    %59 = arith.index_cast %58 : i32 to index
    %c0_23 = arith.constant 0 : index
    %60 = vector.load %arg8[%59, %c0_23] : memref<32x512xf32, #tpu.memory_space<vmem>>, vector<8x512xf32>
    %cst_24 = arith.constant dense<0.000000e+00> : vector<8x512xf32>
    %61 = tpu.matmul %56, %4, %cst_24 {dimension_numbers = #tpu.dot_dimension_numbers<[1], [0], [0], [1], [0, 0, 1, 1], [], []>} : vector<8x128xf32>, vector<128x512xf32>, vector<8x512xf32> -> vector<8x512xf32>
    %62 = arith.addf %60, %61 : vector<8x512xf32>
    %63 = vector.extract_strided_slice %62 {offsets = [0, 0], sizes = [8, 384], strides = [1, 1]} : vector<8x512xf32> to vector<8x384xf32>
    %64 = arith.negf %63 : vector<8x384xf32>
    %65 = math.exp %64 : vector<8x384xf32>
    %cst_25 = arith.constant 1.000000e+00 : f32
    %66 = vector.broadcast %cst_25 : f32 to vector<8x384xf32>
    %67 = arith.addf %66, %65 : vector<8x384xf32>
    %68 = arith.divf %66, %67 : vector<8x384xf32>
    %69 = vector.extract_strided_slice %62 {offsets = [0, 384], sizes = [8, 128], strides = [1, 1]} : vector<8x512xf32> to vector<8x128xf32>
    %70 = math.tanh %69 : vector<8x128xf32>
    %71 = vector.extract_strided_slice %68 {offsets = [0, 0], sizes = [8, 128], strides = [1, 1]} : vector<8x384xf32> to vector<8x128xf32>
    %72 = vector.extract_strided_slice %68 {offsets = [0, 128], sizes = [8, 128], strides = [1, 1]} : vector<8x384xf32> to vector<8x128xf32>
    %73 = vector.extract_strided_slice %68 {offsets = [0, 256], sizes = [8, 128], strides = [1, 1]} : vector<8x384xf32> to vector<8x128xf32>
    %74 = arith.mulf %72, %54 : vector<8x128xf32>
    %75 = arith.mulf %71, %70 : vector<8x128xf32>
    %76 = arith.addf %74, %75 : vector<8x128xf32>
    %77 = math.tanh %76 : vector<8x128xf32>
    %78 = arith.mulf %73, %77 : vector<8x128xf32>
    %c3_i32 = arith.constant 3 : i32
    %c8_i32_26 = arith.constant 8 : i32
    %79 = arith.muli %c3_i32, %c8_i32_26 : i32
    %80 = tpu.assume_multiple %79, 8 : i32
    %81 = arith.index_cast %80 : i32 to index
    %c0_27 = arith.constant 0 : index
    %82 = vector.load %arg8[%81, %c0_27] : memref<32x512xf32, #tpu.memory_space<vmem>>, vector<8x512xf32>
    %cst_28 = arith.constant dense<0.000000e+00> : vector<8x512xf32>
    %83 = tpu.matmul %78, %4, %cst_28 {dimension_numbers = #tpu.dot_dimension_numbers<[1], [0], [0], [1], [0, 0, 1, 1], [], []>} : vector<8x128xf32>, vector<128x512xf32>, vector<8x512xf32> -> vector<8x512xf32>
    %84 = arith.addf %82, %83 : vector<8x512xf32>
    %85 = vector.extract_strided_slice %84 {offsets = [0, 0], sizes = [8, 384], strides = [1, 1]} : vector<8x512xf32> to vector<8x384xf32>
    %86 = arith.negf %85 : vector<8x384xf32>
    %87 = math.exp %86 : vector<8x384xf32>
    %cst_29 = arith.constant 1.000000e+00 : f32
    %88 = vector.broadcast %cst_29 : f32 to vector<8x384xf32>
    %89 = arith.addf %88, %87 : vector<8x384xf32>
    %90 = arith.divf %88, %89 : vector<8x384xf32>
    %91 = vector.extract_strided_slice %84 {offsets = [0, 384], sizes = [8, 128], strides = [1, 1]} : vector<8x512xf32> to vector<8x128xf32>
    %92 = math.tanh %91 : vector<8x128xf32>
    %93 = vector.extract_strided_slice %90 {offsets = [0, 0], sizes = [8, 128], strides = [1, 1]} : vector<8x384xf32> to vector<8x128xf32>
    %94 = vector.extract_strided_slice %90 {offsets = [0, 128], sizes = [8, 128], strides = [1, 1]} : vector<8x384xf32> to vector<8x128xf32>
    %95 = vector.extract_strided_slice %90 {offsets = [0, 256], sizes = [8, 128], strides = [1, 1]} : vector<8x384xf32> to vector<8x128xf32>
    %96 = arith.mulf %94, %76 : vector<8x128xf32>
    %97 = arith.mulf %93, %92 : vector<8x128xf32>
    %98 = arith.addf %96, %97 : vector<8x128xf32>
    %99 = math.tanh %98 : vector<8x128xf32>
    %100 = arith.mulf %95, %99 : vector<8x128xf32>
    %c4_i32 = arith.constant 4 : i32
    %c0_30 = arith.constant 0 : index
    %c0_31 = arith.constant 0 : index
    %101 = vector.load %arg6[%c0_30, %c0_31] : memref<8x128xf32, #tpu.memory_space<vmem>>, vector<8x128xf32>
    tpu.vector_store %arg6[%c0_30, %c0_31], %100 {strides = array<i32>} : memref<8x128xf32, #tpu.memory_space<vmem>>, vector<8x128xf32>,
    %c0_32 = arith.constant 0 : index
    %c0_33 = arith.constant 0 : index
    %102 = vector.load %arg7[%c0_32, %c0_33] : memref<8x128xf32, #tpu.memory_space<vmem>>, vector<8x128xf32>
    tpu.vector_store %arg7[%c0_32, %c0_33], %98 {strides = array<i32>} : memref<8x128xf32, #tpu.memory_space<vmem>>, vector<8x128xf32>,
    %c0_34 = arith.constant 0 : index
    %c0_35 = arith.constant 0 : index
    %103 = vector.load %arg5[%c0_34, %c0_35] : memref<8x128xf32, #tpu.memory_space<vmem>>, vector<8x128xf32>
    tpu.vector_store %arg5[%c0_34, %c0_35], %100 {strides = array<i32>} : memref<8x128xf32, #tpu.memory_space<vmem>>, vector<8x128xf32>,
    return
  }
  func.func @transform_0(%arg0: i32) -> (i32, i32) {
    %c0_i32 = arith.constant 0 : i32
    %c0_i32_0 = arith.constant 0 : i32
    return %arg0, %c0_i32 : i32, i32
  }
  func.func @transform_1(%arg0: i32) -> (i32, i32) {
    %c0_i32 = arith.constant 0 : i32
    %c0_i32_0 = arith.constant 0 : i32
    %c0_i32_1 = arith.constant 0 : i32
    return %c0_i32, %c0_i32_0 : i32, i32
  }
  func.func @transform_2(%arg0: i32) -> (i32, i32) {
    %c0_i32 = arith.constant 0 : i32
    %c0_i32_0 = arith.constant 0 : i32
    %c0_i32_1 = arith.constant 0 : i32
    return %c0_i32, %c0_i32_0 : i32, i32
  }
  func.func @transform_3(%arg0: i32) -> (i32, i32) {
    %c0_i32 = arith.constant 0 : i32
    %c0_i32_0 = arith.constant 0 : i32
    %c0_i32_1 = arith.constant 0 : i32
    return %c0_i32, %c0_i32_0 : i32, i32
  }
  func.func @transform_4(%arg0: i32) -> (i32, i32) {
    %c0_i32 = arith.constant 0 : i32
    %c0_i32_0 = arith.constant 0 : i32
    %c0_i32_1 = arith.constant 0 : i32
    return %c0_i32, %c0_i32_0 : i32, i32
  }
}

</mosaic_0001>

<bundles_post_ra>
// kernel: tpu_custom_call.1
= control target key start
LH: loop header
LB: loop body
LE: loop exit
PB: predicated region body
PF: predicated region fallthrough
CT: control target
= control target key end

     0   :  { %9 = vsyncpa [#allocation6], 0  ;;  %s2040_s0 = inlined_call_operand.vmem [shape: f32[64,4], index: 0, kind: input, shape index: {}]   ;;  %s2041_s1 = inlined_call_operand.vmem [shape: f32[4,512], index: 1, kind: input, shape index: {}]   ;;  %s2042_s2 = inlined_call_operand.hbm [shape: f32[128,512], index: 2, kind: input, shape index: {}]   ;;  %s2043_s3 = inlined_call_operand.vmem [shape: f32[1,512], index: 3, kind: input, shape index: {}]   ;;  %s2044_s4 = inlined_call_operand.hbm [shape: f32[8,128], index: 4, kind: output, shape index: {}]  }
   0x1   :  { %10 = vsyncpa [#allocation7], 0  ;;  %s1523_s15 = smov 0  }
   0x2 LB: > { %s1529_s16 = sadd.s32 4294967295, %s1490_s15   ;;  %p1294_p0 = scmp.ge.s32.totalorder %s1490_s15, 1  ;;  %s1490_s15 = sphi %s1523_s15, %s16_s15  }
   0x3   : > { %p131_p1 = scmp.lt.s32.totalorder %s1490_s15, 3  ;;  %s1492_s17 = smov [#allocation5]  }
   0x4   : > { %s146_s18 = sshll.u32 %s1492_s17, 4  ;;  %p1342_p4 = scmp.eq.s32.totalorder %s1529_s16, 0  ;;  %s147_s18 = int_to_ptr.vmem [resolvable:$true] %s146_s18 }
   0x5   : > { %p1534_p3 = pnand %p1294_p0, %p131_p1  ;;  %s1437_s20 = scalar_lea.vmem %s147_s18, 8192 }
   0x6   : > { %p1438_p8 = scmp.ne.s32.totalorder %s147_s18, %s1437_s20  ;;  %p1445_p11 = scmp.lt.s32.totalorder %s147_s18, %s147_s18 }
   0x7   : > { %p1338_p5 = pneg %p1534_p3  ;;  %p1446_p12 = scmp.lt.s32.totalorder %s1437_s20, %s1437_s20 }
   0x9   : > { %p1339_p6 = pnand %p1342_p4, %p1338_p5  ;;  %p1447_p13 = por %p1446_p12, %p1445_p11 }
   0xb   : > { %p1428_p7 = pneg %p1339_p6 }
   0xd   : > { %p1440_p9 = pnand %p1438_p8, %p1428_p7 }
   0xf   : > { %p1441_p10 = pneg %p1440_p9 }
  0x11   : > { %p1448_p2 = pnand %p1447_p13, %p1441_p10 }
  0x13   : > { %1451 = shalt.err (!%p1448_p2)
}
  0x14   : > { %s1493_s21 = smov 512   ;;  %s1494_s22 = smov 32  }
  0x15   : > { %1341 = dma.hbm_to_vmem [thread:$0]  (!%p1339_p6), %s2042_s2, 8192, %s147_s18, [#allocation6], %s1493_s21, %s1493_s21, %s1494_s22  }
  0x16   : > { %174 = sbr.rel (%p1534_p3) target bundleno = 1083 (0x43b), region = 36 }
  0x1b   : > { %1481 = dma.done.wait (%p1342_p4), [#allocation6], 8192  }
  0x1c   : > { %1483 = vsyncadd (%p1342_p4), [#allocation6], 4294959104  ;;  %s1299_s25 = sshll.u32 %s1529_s16, 2  ;;  %p2100_p1 = scmp.ne.s32.totalorder %s1529_s16, 0 }
  0x1d   : > { %p196_p0 = scmp.lt.s32.totalorder %s1299_s25, 7 }
  0x1e   : > { %204 = sbr.rel (%p2100_p1) target bundleno = 37 (0x25), region = 44 }
  0x1f   : > { %s2201_s25 = smov (!%p196_p0, %s1299_s25), 7 }
  0x20   : > { %s1300_s26 = sshll.u32 %s2201_s25, 3 }
  0x21   : > { %s1556_s29 = scalar_lea.vmem %s2040_s0, %s1300_s26 }
  0x23   : > { %v1495_v0 = vmov 0.0  }
  0x24   : > { %205 = vst [vmem:[#allocation2] sm:$0xff] %v1495_v0  ;;  %206 = vst [vmem:[#allocation3] sm:$0xff] %v1495_v0 }
  0x25 PF: > { %v207_v1 = vld [vmem:[%s2041_s1] sm:$0xff]  ;;  %vm316_vm0 = vcmask 1043456   ;;  %v208_v2 = vld [vmem:[%s2041_s1 + $0x8] sm:$0xff]  ;;  %v2047_v5 = vmov 0.0   ;;  %vm303_vm1 = vcmask 31744   ;;  %v1569_v7 = vld [vmem:[#allocation5 + $0x1e8] sm:$0xff] }
  0x26   : > { %v301_v3 = vcombine.high %v207_v1, %v207_v1  ;;  %v302_v4 = vcombine.high %v208_v2, %v208_v2  ;;  %389 = vmatprep.mubr.f32.mxu0 %v2047_v5  ;;  %478 = vmatprep.mubr.f32.mxu1 %v2047_v5  ;;  %v273_v6 = vld [vmem:[%s1556_s29] sm:$0xff]  ;;  %2101 = vst [vmem:[#allocation11_spill] sm:$0xff] %v1569_v7  ;;  %v1571_v8 = vld [vmem:[#allocation5 + $0x1f8] sm:$0xff]  ;;  %v1573_v9 = vld [vmem:[#allocation5 + $0x1e0] sm:$0xff]  ;;  %s1497_s10 = smov [#allocation8]   ;;  %p1344_p2 = scmp.eq.s32.totalorder %s1529_s16, 1 }
  0x27   : > { %2102 = vst [vmem:[#allocation12_spill] sm:$0xff] %v1571_v8  ;;  %v1575_v10 = vld [vmem:[#allocation5 + $0x1f0] sm:$0xff]  ;;  %v1579_v11 = vld [vmem:[#allocation5 + $0x1c8] sm:$0xff]  ;;  %v1581_v12 = vld [vmem:[#allocation5 + $0x1d8] sm:$0xff]  ;;  %s1239_s11 = sshll.u32 %s1497_s10, 4  ;;  %s1240_s11 = int_to_ptr.vmem [resolvable:$true] %s1239_s11 }
  0x28   : > { %1302 = vmatprep.subr.msk.mxu0 %vm316_vm0, %v301_v3  ;;  %1308 = vmatprep.subr.msk.mxu1 %vm316_vm0, %v302_v4  ;;  %v1585_v13 = vld [vmem:[#allocation5 + $0x1c0] sm:$0xff]  ;;  %v1587_v14 = vld [vmem:[#allocation5 + $0x1d0] sm:$0xff]  ;;  %v1591_v15 = vld [vmem:[#allocation5 + $0x1a8] sm:$0xff]  ;;  %s1452_s12 = scalar_lea.vmem %s1240_s11, 128  ;;  %p1459_p6 = scmp.lt.s32.totalorder %s1240_s11, %s1240_s11 }
  0x29   : > { %1303 = vmatpush1.msk.msra.mxu0 %vm316_vm0, %v207_v1  ;;  %1309 = vmatpush1.msk.msra.mxu1 %vm316_vm0, %v208_v2  ;;  %v1593_v16 = vld [vmem:[#allocation5 + $0x1b8] sm:$0xff]  ;;  %v1597_v17 = vld [vmem:[#allocation5 + $0x1a0] sm:$0xff]  ;;  %v1599_v18 = vld [vmem:[#allocation5 + $0x1b0] sm:$0xff]  ;;  %p1453_p3 = scmp.ne.s32.totalorder %s1240_s11, %s1452_s12  ;;  %p1460_p7 = scmp.lt.s32.totalorder %s1452_s12, %s1452_s12 }
  0x2a   : > { %1304 = vmatmul.mubr.msk.f32.vlgmr.msra.gmra.mxu0 %vm303_vm1, %v273_v6  ;;  %528 = vmatprep.subr.mxu0 %v1569_v7  ;;  %v1603_v19 = vld [vmem:[#allocation5 + $0x188] sm:$0xff]  ;;  %v1605_v20 = vld [vmem:[#allocation5 + $0x198] sm:$0xff]  ;;  %v1609_v21 = vld [vmem:[#allocation5 + $0x180] sm:$0xff] }
  0x2b   : > { %599 = vmatprep.subr.mxu1 %v1571_v8  ;;  %1310 = vmatmul.mubr.msk.f32.vlgmr.msra.gmra.mxu1 %vm303_vm1, %v273_v6  ;;  %v1611_v22 = vld [vmem:[#allocation5 + $0x190] sm:$0xff]  ;;  %v1615_v23 = vld [vmem:[#allocation5 + $0x168] sm:$0xff]  ;;  %v1617_v24 = vld [vmem:[#allocation5 + $0x178] sm:$0xff]  ;;  %p1454_p4 = pnand %p1453_p3, %p1344_p2  ;;  %p1461_p8 = por %p1460_p7, %p1459_p6 }
  0x2c   : > { %529 = vmatpush1.msra.mxu0 %v1573_v9  ;;  %600 = vmatpush1.msra.mxu1 %v1575_v10  ;;  %v1621_v25 = vld [vmem:[#allocation5 + $0x160] sm:$0xff]  ;;  %v1623_v26 = vld [vmem:[#allocation5 + $0x170] sm:$0xff]  ;;  %v1627_v27 = vld [vmem:[#allocation5 + $0x148] sm:$0xff] }
  0x2d   : > { %530 = vmatprep.subr.mxu0 %v1579_v11  ;;  %601 = vmatprep.subr.mxu1 %v1581_v12  ;;  %v1629_v28 = vld [vmem:[#allocation5 + $0x158] sm:$0xff]  ;;  %v1633_v29 = vld [vmem:[#allocation5 + $0x140] sm:$0xff]  ;;  %v1635_v30 = vld [vmem:[#allocation5 + $0x150] sm:$0xff]  ;;  %p1455_p5 = pneg %p1454_p4 }
  0x2e   : > { %531 = vmatpush1.msra.mxu0 %v1585_v13  ;;  %602 = vmatpush1.msra.mxu1 %v1587_v14  ;;  %v1639_v31 = vld [vmem:[#allocation5 + $0x128] sm:$0xff]  ;;  %v1641_v32 = vld [vmem:[#allocation5 + $0x138] sm:$0xff]  ;;  %v1645_v33 = vld [vmem:[#allocation5 + $0x120] sm:$0xff] }
  0x2f   : > { %532 = vmatprep.subr.mxu0 %v1591_v15  ;;  %603 = vmatprep.subr.mxu1 %v1593_v16  ;;  %v1647_v34 = vld [vmem:[#allocation5 + $0x130] sm:$0xff]  ;;  %v1651_v35 = vld [vmem:[#allocation5 + $0x108] sm:$0xff]  ;;  %v1653_v36 = vld [vmem:[#allocation5 + $0x118] sm:$0xff]  ;;  %p1462_p9 = pnand %p1461_p8, %p1455_p5 }
  0x30   : > { %533 = vmatpush1.msra.mxu0 %v1597_v17  ;;  %604 = vmatpush1.msra.mxu1 %v1599_v18  ;;  %v1657_v37 = vld [vmem:[#allocation5 + $0x100] sm:$0xff]  ;;  %v1659_v38 = vld [vmem:[#allocation5 + $0x110] sm:$0xff]  ;;  %v1663_v39 = vld [vmem:[#allocation5 + $0xe8] sm:$0xff] }
  0x31   : > { %534 = vmatprep.subr.mxu0 %v1603_v19  ;;  %605 = vmatprep.subr.mxu1 %v1605_v20  ;;  %v1665_v40 = vld [vmem:[#allocation5 + $0xf8] sm:$0xff]  ;;  %v1669_v41 = vld [vmem:[#allocation5 + $0xe0] sm:$0xff]  ;;  %v1673_v42 = vld [vmem:[#allocation5 + $0xf0] sm:$0xff] }
  0x32   : > { %535 = vmatpush1.msra.mxu0 %v1609_v21  ;;  %606 = vmatpush1.msra.mxu1 %v1611_v22  ;;  %v274_v43 = vld [vmem:[%s1556_s29 + $0x8] sm:$0xff]  ;;  %v1678_v44 = vld [vmem:[#allocation5 + $0xc8] sm:$0xff]  ;;  %v1684_v46 = vld [vmem:[#allocation5 + $0xc0] sm:$0xff] }
  0x33   : > { %536 = vmatprep.subr.mxu0 %v1615_v23  ;;  %607 = vmatprep.subr.mxu1 %v1617_v24  ;;  %v1680_v45 = vld [vmem:[#allocation5 + $0xd8] sm:$0xff]  ;;  %v1688_v47 = vld [vmem:[#allocation5 + $0xd0] sm:$0xff]  ;;  %v1690_v48 = vld [vmem:[#allocation5 + $0xa8] sm:$0xff] }
  0x34   : > { %537 = vmatpush1.msra.mxu0 %v1621_v25  ;;  %608 = vmatpush1.msra.mxu1 %v1623_v26  ;;  %2103 = vst [vmem:[#allocation13_spill] sm:$0xff] %v1690_v48  ;;  %v1694_v49 = vld [vmem:[#allocation5 + $0xb8] sm:$0xff]  ;;  %v1698_v50 = vld [vmem:[#allocation5 + $0xa0] sm:$0xff]  ;;  %v1702_v51 = vld [vmem:[#allocation5 + $0xb0] sm:$0xff] }
  0x35   : > { %538 = vmatprep.subr.mxu0 %v1627_v27  ;;  %609 = vmatprep.subr.mxu1 %v1629_v28  ;;  %2104 = vst [vmem:[#allocation14_spill] sm:$0xff] %v1694_v49  ;;  %2105 = vst [vmem:[#allocation15_spill] sm:$0xff] %v1698_v50  ;;  %v275_v52 = vld [vmem:[%s1556_s29 + $0x10] sm:$0xff]  ;;  %v1707_v53 = vld [vmem:[#allocation5 + $0x88] sm:$0xff] }
  0x36   : > { %539 = vmatpush1.msra.mxu0 %v1633_v29  ;;  %610 = vmatpush1.msra.mxu1 %v1635_v30  ;;  %2106 = vst [vmem:[#allocation16_spill] sm:$0xff] %v1702_v51  ;;  %2107 = vst [vmem:[#allocation17_spill] sm:$0xff] %v1707_v53  ;;  %v1709_v54 = vld [vmem:[#allocation5 + $0x98] sm:$0xff]  ;;  %v1713_v55 = vld [vmem:[#allocation5 + $0x80] sm:$0xff] }
  0x37   : > { %540 = vmatprep.subr.mxu0 %v1639_v31  ;;  %611 = vmatprep.subr.mxu1 %v1641_v32  ;;  %2108 = vst [vmem:[#allocation18_spill] sm:$0xff] %v1709_v54  ;;  %2109 = vst [vmem:[#allocation19_spill] sm:$0xff] %v1713_v55  ;;  %v1717_v56 = vld [vmem:[#allocation5 + $0x90] sm:$0xff]  ;;  %v1719_v57 = vld [vmem:[#allocation5 + $0x68] sm:$0xff] }
  0x38   : > { %541 = vmatpush1.msra.mxu0 %v1645_v33  ;;  %612 = vmatpush1.msra.mxu1 %v1647_v34  ;;  %2110 = vst [vmem:[#allocation20_spill] sm:$0xff] %v1717_v56  ;;  %2111 = vst [vmem:[#allocation21_spill] sm:$0xff] %v1719_v57  ;;  %v1723_v58 = vld [vmem:[#allocation5 + $0x78] sm:$0xff]  ;;  %v1727_v59 = vld [vmem:[#allocation5 + $0x60] sm:$0xff] }
  0x39   : > { %542 = vmatprep.subr.mxu0 %v1651_v35  ;;  %613 = vmatprep.subr.mxu1 %v1653_v36  ;;  %2112 = vst [vmem:[#allocation22_spill] sm:$0xff] %v1723_v58  ;;  %2113 = vst [vmem:[#allocation23_spill] sm:$0xff] %v1727_v59  ;;  %v1731_v60 = vld [vmem:[#allocation5 + $0x70] sm:$0xff]  ;;  %v276_v61 = vld [vmem:[%s1556_s29 + $0x18] sm:$0xff] }
  0x3a   : > { %543 = vmatpush1.msra.mxu0 %v1657_v37  ;;  %614 = vmatpush1.msra.mxu1 %v1659_v38  ;;  %2114 = vst [vmem:[#allocation24_spill] sm:$0xff] %v1731_v60  ;;  %v1736_v62 = vld [vmem:[#allocation5 + $0x48] sm:$0xff]  ;;  %v1738_v63 = vld [vmem:[#allocation5 + $0x58] sm:$0xff]  ;;  %v1742_v0 = vld [vmem:[#allocation5 + $0x40] sm:$0xff] }
  0x3b   : > { %544 = vmatprep.subr.mxu0 %v1663_v39  ;;  %615 = vmatprep.subr.mxu1 %v1665_v40  ;;  %2115 = vst [vmem:[#allocation25_spill] sm:$0xff] %v1736_v62  ;;  %2116 = vst [vmem:[#allocation26_spill] sm:$0xff] %v1738_v63  ;;  %v1746_v1 = vld [vmem:[#allocation5 + $0x50] sm:$0xff]  ;;  %v1748_v2 = vld [vmem:[#allocation5 + $0x28] sm:$0xff] }
  0x3c   : > { %395 = vmatprep.mubr.f32.mxu0 %v2047_v5  ;;  %545 = vmatpush1.msra.mxu0 %v1669_v41  ;;  %2117 = vst [vmem:[#allocation27_spill] sm:$0xff] %v1742_v0  ;;  %2118 = vst [vmem:[#allocation28_spill] sm:$0xff] %v1746_v1  ;;  %v1752_v3 = vld [vmem:[#allocation5 + $0x38] sm:$0xff]  ;;  %v1756_v4 = vld [vmem:[#allocation5 + $0x20] sm:$0xff] }
  0x3d   : > { %616 = vmatpush1.msra.mxu1 %v1673_v42  ;;  %1305 = vmatmul.mubr.msk.f32.gmra.mxu0 %vm303_vm1, %v274_v43  ;;  %2119 = vst [vmem:[#allocation29_spill] sm:$0xff] %v1748_v2  ;;  %2120 = vst [vmem:[#allocation30_spill] sm:$0xff] %v1752_v3  ;;  %v1758_v6 = vld [vmem:[#allocation5 + $0x30] sm:$0xff] }
  0x3e   : > { %546 = vmatprep.subr.mxu0 %v1678_v44  ;;  %617 = vmatprep.subr.mxu1 %v1680_v45  ;;  %2121 = vst [vmem:[#allocation31_spill] sm:$0xff] %v1756_v4  ;;  %2122 = vst [vmem:[#allocation32_spill] sm:$0xff] %v1758_v6 }
  0x3f   : > { %484 = vmatprep.mubr.f32.mxu1 %v2047_v5  ;;  %547 = vmatpush1.msra.mxu0 %v1684_v46 }
  0x40   : > { %618 = vmatpush1.msra.mxu1 %v1688_v47  ;;  %548 = vmatprep.subr.mxu0 %v1690_v48 }
  0x41   : > { %1311 = vmatmul.mubr.msk.f32.gmra.mxu1 %vm303_vm1, %v274_v43  ;;  %619 = vmatprep.subr.mxu1 %v1694_v49  ;;  %v1762_v43 = vld [vmem:[#allocation5 + $0x8] sm:$0xff] }
  0x42   : > { %401 = vmatprep.mubr.f32.mxu0 %v2047_v5  ;;  %549 = vmatpush1.msra.mxu0 %v1698_v50  ;;  %2123 = vst [vmem:[#allocation33_spill] sm:$0xff] %v1762_v43 }
  0x43   : > { %620 = vmatpush1.msra.mxu1 %v1702_v51  ;;  %1306 = vmatmul.mubr.msk.f32.gmra.mxu0 %vm303_vm1, %v275_v52 }
  0x44   : > { %550 = vmatprep.subr.mxu0 %v1707_v53  ;;  %621 = vmatprep.subr.mxu1 %v1709_v54 }
  0x45   : > { %490 = vmatprep.mubr.f32.mxu1 %v2047_v5  ;;  %551 = vmatpush1.msra.mxu0 %v1713_v55 }
  0x46   : > { %622 = vmatpush1.msra.mxu1 %v1717_v56  ;;  %552 = vmatprep.subr.mxu0 %v1719_v57 }
  0x47   : > { %1312 = vmatmul.mubr.msk.f32.gmra.mxu1 %vm303_vm1, %v275_v52  ;;  %623 = vmatprep.subr.mxu1 %v1723_v58  ;;  %v1764_v52 = vld [vmem:[#allocation5 + $0x18] sm:$0xff] }
  0x48   : > { %407 = vmatprep.mubr.f32.mxu0 %v2047_v5  ;;  %553 = vmatpush1.msra.mxu0 %v1727_v59  ;;  %2124 = vst [vmem:[#allocation34_spill] sm:$0xff] %v1764_v52 }
  0x49   : > { %624 = vmatpush1.msra.mxu1 %v1731_v60  ;;  %1307 = vmatmul.mubr.msk.f32.gmra.mxu0 %vm303_vm1, %v276_v61 }
  0x4a   : > { %554 = vmatprep.subr.mxu0 %v1736_v62  ;;  %625 = vmatprep.subr.mxu1 %v1738_v63  ;;  %v1768_v63 = vld [vmem:[#allocation5] sm:$0xff] }
  0x4b   : > { %496 = vmatprep.mubr.f32.mxu1 %v2047_v5  ;;  %555 = vmatpush1.msra.mxu0 %v1742_v0  ;;  %2125 = vst [vmem:[#allocation35_spill] sm:$0xff] %v1768_v63  ;;  %v1772_v5 = vld [vmem:[#allocation5 + $0x10] sm:$0xff] }
  0x4c   : > { %626 = vmatpush1.msra.mxu1 %v1746_v1  ;;  %556 = vmatprep.subr.mxu0 %v1748_v2  ;;  %2126 = vst [vmem:[#allocation36_spill] sm:$0xff] %v1772_v5  ;;  %v519_v2 = vld [vmem:[#allocation2] sm:$0xff]  ;;  %v2127_v1 = vmov 0.0  }
  0x4d   : > { %1313 = vmatmul.mubr.msk.f32.gmra.mxu1 %vm303_vm1, %v276_v61  ;;  %627 = vmatprep.subr.mxu1 %v1752_v3  ;;  %v2128_v61 = vld [vmem:[#allocation26_spill] sm:$0xff] }
  0x4e   : > { %557 = vmatpush1.msra.mxu0 %v1756_v4  ;;  %628 = vmatpush1.msra.mxu1 %v1758_v6 }
  0x4f   : > { %558 = vmatprep.subr.mxu0 %v1762_v43  ;;  %629 = vmatprep.subr.mxu1 %v1764_v52 }
  0x50   : > { %559 = vmatpush1.msra.mxu0 %v1768_v63  ;;  %592 = vmatprep.mubr.f32.mxu0 %v2127_v1 }
  0x51   : > { %630 = vmatpush1.msra.mxu1 %v1772_v5  ;;  %663 = vmatprep.mubr.f32.mxu1 %v2127_v1 }
  0x52   : > { %593 = vmatmul.mubr.f32.vlgmr.msra.gmra.mxu0 %v519_v2  ;;  %664 = vmatmul.mubr.f32.vlgmr.msra.gmra.mxu1 %v519_v2  ;;  %v2129_v2 = vld [vmem:[#allocation28_spill] sm:$0xff] }
  0x53   : > { %705 = vmatprep.subr.mxu0 %v1569_v7  ;;  %776 = vmatprep.subr.mxu1 %v1571_v8 }
  0x54   : > { %706 = vmatpush1.msra.mxu0 %v1573_v9  ;;  %777 = vmatpush1.msra.mxu1 %v1575_v10 }
  0x55   : > { %707 = vmatprep.subr.mxu0 %v1579_v11  ;;  %778 = vmatprep.subr.mxu1 %v1581_v12 }
  0x56   : > { %708 = vmatpush1.msra.mxu0 %v1585_v13  ;;  %779 = vmatpush1.msra.mxu1 %v1587_v14 }
  0x57   : > { %709 = vmatprep.subr.mxu0 %v1591_v15  ;;  %780 = vmatprep.subr.mxu1 %v1593_v16 }
  0x58   : > { %710 = vmatpush1.msra.mxu0 %v1597_v17  ;;  %781 = vmatpush1.msra.mxu1 %v1599_v18 }
  0x59   : > { %711 = vmatprep.subr.mxu0 %v1603_v19  ;;  %782 = vmatprep.subr.mxu1 %v1605_v20 }
  0x5a   : > { %712 = vmatpush1.msra.mxu0 %v1609_v21  ;;  %783 = vmatpush1.msra.mxu1 %v1611_v22 }
  0x5b   : > { %713 = vmatprep.subr.mxu0 %v1615_v23  ;;  %784 = vmatprep.subr.mxu1 %v1617_v24 }
  0x5c   : > { %714 = vmatpush1.msra.mxu0 %v1621_v25  ;;  %785 = vmatpush1.msra.mxu1 %v1623_v26 }
  0x5d   : > { %715 = vmatprep.subr.mxu0 %v1627_v27  ;;  %786 = vmatprep.subr.mxu1 %v1629_v28 }
  0x5e   : > { %716 = vmatpush1.msra.mxu0 %v1633_v29  ;;  %787 = vmatpush1.msra.mxu1 %v1635_v30 }
  0x5f   : > { %717 = vmatprep.subr.mxu0 %v1639_v31  ;;  %788 = vmatprep.subr.mxu1 %v1641_v32 }
  0x60   : > { %718 = vmatpush1.msra.mxu0 %v1645_v33  ;;  %789 = vmatpush1.msra.mxu1 %v1647_v34 }
  0x61   : > { %719 = vmatprep.subr.mxu0 %v1651_v35  ;;  %790 = vmatprep.subr.mxu1 %v1653_v36 }
  0x62   : > { %720 = vmatpush1.msra.mxu0 %v1657_v37  ;;  %791 = vmatpush1.msra.mxu1 %v1659_v38 }
  0x63   : > { %721 = vmatprep.subr.mxu0 %v1663_v39  ;;  %792 = vmatprep.subr.mxu1 %v1665_v40 }
  0x64   : > { %722 = vmatpush1.msra.mxu0 %v1669_v41  ;;  %793 = vmatpush1.msra.mxu1 %v1673_v42 }
  0x65   : > { %723 = vmatprep.subr.mxu0 %v1678_v44  ;;  %794 = vmatprep.subr.mxu1 %v1680_v45 }
  0x66   : > { %724 = vmatpush1.msra.mxu0 %v1684_v46  ;;  %795 = vmatpush1.msra.mxu1 %v1688_v47 }
  0x67   : > { %725 = vmatprep.subr.mxu0 %v1690_v48  ;;  %796 = vmatprep.subr.mxu1 %v1694_v49 }
  0x68   : > { %726 = vmatpush1.msra.mxu0 %v1698_v50  ;;  %797 = vmatpush1.msra.mxu1 %v1702_v51 }
  0x69   : > { %727 = vmatprep.subr.mxu0 %v1707_v53  ;;  %798 = vmatprep.subr.mxu1 %v1709_v54  ;;  %v2130_v54 = vld [vmem:[#allocation29_spill] sm:$0xff] }
  0x6a   : > { %728 = vmatpush1.msra.mxu0 %v1713_v55  ;;  %799 = vmatpush1.msra.mxu1 %v1717_v56 }
  0x6b   : > { %729 = vmatprep.subr.mxu0 %v1719_v57  ;;  %800 = vmatprep.subr.mxu1 %v1723_v58 }
  0x6c   : > { %730 = vmatpush1.msra.mxu0 %v1727_v59  ;;  %801 = vmatpush1.msra.mxu1 %v1731_v60 }
  0x6d   : > { %731 = vmatprep.subr.mxu0 %v1736_v62  ;;  %802 = vmatprep.subr.mxu1 %v2128_v61 }
  0x6e   : > { %732 = vmatpush1.msra.mxu0 %v1742_v0  ;;  %803 = vmatpush1.msra.mxu1 %v2129_v2 }
  0x6f   : > { %733 = vmatprep.subr.mxu0 %v2130_v54  ;;  %804 = vmatprep.subr.mxu1 %v1752_v3  ;;  %v279_v3 = vlaneseq }
  0x70   : > { %734 = vmatpush1.msra.mxu0 %v1756_v4  ;;  %805 = vmatpush1.msra.mxu1 %v1758_v6 }
  0x71   : > { %735 = vmatprep.subr.mxu0 %v1762_v43  ;;  %806 = vmatprep.subr.mxu1 %v1764_v52  ;;  %v280_v4 = vshrl.u32 %v279_v3, 7  ;;  %v277_v52 = vld [vmem:[%s2043_s3] sm:$0xf] }
  0x72   : > { %736 = vmatpush1.msra.mxu0 %v1768_v63  ;;  %769 = vmatprep.mubr.f32.mxu0 %v2127_v1 }
  0x73   : > { %807 = vmatpush1.msra.mxu1 %v1772_v5  ;;  %840 = vmatprep.mubr.f32.mxu1 %v2127_v1  ;;  %v281_v6 = vsub.s32 0, %v280_v4  ;;  %v285_v63 = vsub.s32 1, %v280_v4  ;;  %v289_v61 = vsub.s32 2, %v280_v4 }
  0x74   : > { %882 = vmatprep.subr.mxu0 %v1569_v7  ;;  %953 = vmatprep.subr.mxu1 %v1571_v8  ;;  %v293_v7 = vsub.s32 3, %v280_v4 }
  0x75   : > { %v282_v0 = vrot.slane %v277_v52, %v281_v6  ;;  %v286_v1 = vrot.slane %v277_v52, %v285_v63  ;;  %v290_v59 = vrot.slane %v277_v52, %v289_v61 }
  0x76   : > { %v294_v57 = vrot.slane %v277_v52, %v293_v7 }
  0xea   : > { %v391_v54 = vpop.f32.mrf.mxu0 }
  0xeb   : > { %v480_v43 = vpop.f32.mrf.mxu1 }
  0xec   : > { %v393_v2 = vpop.f32.mrf.mxu0 }
  0xed   : > { %v482_v62 = vpop.f32.mrf.mxu1 }
  0xfd   : > { %v397_v5 = vpop.f32.mrf.mxu0 }
  0xfe   : > { %v1851_v60 = vadd.f32 %v397_v5, %v282_v0 }
  0xff   : > { %v399_v8 = vpop.f32.mrf.mxu0 }
 0x100   : > { %2131 = vst [vmem:[#allocation37_spill] sm:$0xff] %v1851_v60  ;;  %v1853_v3 = vadd.f32 %v399_v8, %v286_v1 }
 0x101   : > { %v486_v58 = vpop.f32.mrf.mxu1 }
 0x102   : > { %2132 = vst [vmem:[#allocation38_spill] sm:$0xff] %v1853_v3  ;;  %v1855_v56 = vadd.f32 %v486_v58, %v290_v59 }
 0x103   : > { %v403_v55 = vpop.f32.mrf.mxu0  ;;  %v488_v53 = vpop.f32.mrf.mxu1 }
 0x104   : > { %2133 = vst [vmem:[#allocation39_spill] sm:$0xff] %v1855_v56  ;;  %v1857_v51 = vadd.f32 %v403_v55, %v282_v0  ;;  %v1859_v6 = vadd.f32 %v488_v53, %v294_v57 }
 0x105   : > { %v405_v50 = vpop.f32.mrf.mxu0 }
 0x106   : > { %2134 = vst [vmem:[#allocation40_spill] sm:$0xff] %v1857_v51  ;;  %2135 = vst [vmem:[#allocation41_spill] sm:$0xff] %v1859_v6  ;;  %v1861_v49 = vadd.f32 %v405_v50, %v286_v1  ;;  %v392_v50 = vadd.f32 %v391_v54, %v282_v0  ;;  %v394_v6 = vadd.f32 %v393_v2, %v286_v1 }
 0x107   : > { %v492_v5 = vpop.f32.mrf.mxu1 }
 0x108   : > { %2136 = vst [vmem:[#allocation42_spill] sm:$0xff] %v1861_v49  ;;  %v1863_v63 = vadd.f32 %v492_v5, %v290_v59 }
 0x109   : > { %v409_v4 = vpop.f32.mrf.mxu0  ;;  %v494_v61 = vpop.f32.mrf.mxu1 }
 0x10a   : > { %2137 = vst [vmem:[#allocation43_spill] sm:$0xff] %v1863_v63  ;;  %v1865_v8 = vadd.f32 %v409_v4, %v282_v0  ;;  %v1867_v3 = vadd.f32 %v494_v61, %v294_v57 }
 0x10b   : > { %v411_v7 = vpop.f32.mrf.mxu0 }
 0x10c   : > { %2138 = vst [vmem:[#allocation44_spill] sm:$0xff] %v1865_v8  ;;  %2139 = vst [vmem:[#allocation45_spill] sm:$0xff] %v1867_v3  ;;  %v1869_v58 = vadd.f32 %v411_v7, %v286_v1  ;;  %v481_v8 = vadd.f32 %v480_v43, %v290_v59  ;;  %v483_v3 = vadd.f32 %v482_v62, %v294_v57 }
 0x10d   : > { %v498_v52 = vpop.f32.mrf.mxu1 }
 0x10e   : > { %2140 = vst [vmem:[#allocation46_spill] sm:$0xff] %v1869_v58  ;;  %v1871_v55 = vadd.f32 %v498_v52, %v290_v59 }
 0x10f   : > { %v500_v53 = vpop.f32.mrf.mxu1 }
 0x110   : > { %2141 = vst [vmem:[#allocation47_spill] sm:$0xff] %v1871_v55  ;;  %v1873_v51 = vadd.f32 %v500_v53, %v294_v57 }
 0x112   : > { %2142 = vst [vmem:[#allocation48_spill] sm:$0xff] %v1873_v51  ;;  %v594_v49 = vpop.f32.mrf.mxu0  ;;  %v665_v61 = vpop.f32.mrf.mxu1 }
 0x113   : > { %v670_v5 = vadd.f32 %v594_v49, %v392_v50  ;;  %v672_v7 = vadd.f32 %v665_v61, %v481_v8  ;;  %v2146_v8 = vld [vmem:[#allocation16_spill] sm:$0xff]  ;;  %v2149_v50 = vld [vmem:[#allocation19_spill] sm:$0xff]  ;;  %v2152_v61 = vld [vmem:[#allocation22_spill] sm:$0xff] }
 0x114   : > { %v596_v63 = vpop.f32.mrf.mxu0  ;;  %v667_v58 = vpop.f32.mrf.mxu1 }
 0x115   : > { %v1314_v56 = vmul.f32 -1.442695, %v670_v5  ;;  %v671_v60 = vadd.f32 %v596_v63, %v394_v6  ;;  %v1316_v52 = vmul.f32 -1.442695, %v672_v7  ;;  %v673_v48 = vadd.f32 %v667_v58, %v483_v3  ;;  %v2145_v63 = vld [vmem:[#allocation15_spill] sm:$0xff]  ;;  %v2147_v58 = vld [vmem:[#allocation17_spill] sm:$0xff] }
 0x116   : > { %v2150_v5 = vld [vmem:[#allocation20_spill] sm:$0xff]  ;;  %v2153_v7 = vld [vmem:[#allocation23_spill] sm:$0xff] }
 0x117   : > { %1362 = vpow2.f32 %v1314_v56  ;;  %v1315_v4 = vmul.f32 -1.442695, %v671_v60  ;;  %v520_v56 = vld [vmem:[#allocation3] sm:$0xff] }
 0x119   : > { %1364 = vpow2.f32 %v1315_v4  ;;  %v2151_v4 = vld [vmem:[#allocation21_spill] sm:$0xff] }
 0x11a   : > { %1366 = vpow2.f32 %v1316_v52  ;;  %v2154_v52 = vld [vmem:[#allocation24_spill] sm:$0xff] }
 0x124   : > { %v1363_v55 = vpop.eup %1362 }
 0x125   : > { %v683_v53 = vadd.f32 1.0, %v1363_v55  ;;  %v2148_v55 = vld [vmem:[#allocation18_spill] sm:$0xff] }
 0x126   : > { %v1365_v51 = vpop.eup %1364 }
 0x127   : > { %1368 = vrcp.f32 %v683_v53  ;;  %v684_v54 = vadd.f32 1.0, %v1365_v51  ;;  %v1367_v49 = vpop.eup %1366  ;;  %v2144_v51 = vld [vmem:[#allocation14_spill] sm:$0xff]  ;;  %v2155_v53 = vld [vmem:[#allocation25_spill] sm:$0xff] }
 0x128   : > { %1370 = vtanh.f32 %v673_v48  ;;  %v685_v2 = vadd.f32 1.0, %v1367_v49  ;;  %v2143_v48 = vld [vmem:[#allocation13_spill] sm:$0xff]  ;;  %v2157_v49 = vld [vmem:[#allocation27_spill] sm:$0xff] }
 0x129   : > { %1372 = vrcp.f32 %v684_v54  ;;  %v2156_v54 = vld [vmem:[#allocation26_spill] sm:$0xff] }
 0x12a   : > { %1374 = vrcp.f32 %v685_v2  ;;  %v2162_v2 = vld [vmem:[#allocation32_spill] sm:$0xff] }
 0x134   : > { %v1369_v0 = vpop.eup %1368 }
 0x135   : > { %v1371_v60 = vpop.eup %1370 }
 0x136   : > { %v1373_v1 = vpop.eup %1372  ;;  %v694_v43 = vmul.f32 %v1371_v60, %v1369_v0  ;;  %v2158_v0 = vld [vmem:[#allocation28_spill] sm:$0xff]  ;;  %v2160_v60 = vld [vmem:[#allocation30_spill] sm:$0xff] }
 0x137   : > { %v693_v59 = vmul.f32 %v1373_v1, %v520_v56  ;;  %v1375_v57 = vpop.eup %1374  ;;  %v2159_v56 = vld [vmem:[#allocation29_spill] sm:$0xff]  ;;  %v2161_v1 = vld [vmem:[#allocation31_spill] sm:$0xff] }
 0x139   : > { %v1875_v6 = vadd.f32 %v694_v43, %v693_v59  ;;  %v2163_v59 = vld [vmem:[#allocation33_spill] sm:$0xff]  ;;  %v2164_v43 = vld [vmem:[#allocation34_spill] sm:$0xff] }
 0x13b   : > { %1376 = vtanh.f32 %v1875_v6 }
 0x148   : > { %v1377_v62 = vpop.eup %1376 }
 0x149   : > { %v697_v3 = vmul.f32 %v1377_v62, %v1375_v57  ;;  %v2165_v57 = vld [vmem:[#allocation35_spill] sm:$0xff]  ;;  %v2166_v62 = vmov 0.0  }
 0x14b   : > { %770 = vmatmul.mubr.f32.vlgmr.msra.gmra.mxu0 %v697_v3  ;;  %841 = vmatmul.mubr.f32.vlgmr.msra.gmra.mxu1 %v697_v3  ;;  %v2167_v3 = vld [vmem:[#allocation36_spill] sm:$0xff] }
 0x14c   : > { %883 = vmatpush1.msra.mxu0 %v1573_v9  ;;  %954 = vmatpush1.msra.mxu1 %v1575_v10 }
 0x14d   : > { %884 = vmatprep.subr.mxu0 %v1579_v11  ;;  %955 = vmatprep.subr.mxu1 %v1581_v12 }
 0x14e   : > { %885 = vmatpush1.msra.mxu0 %v1585_v13  ;;  %956 = vmatpush1.msra.mxu1 %v1587_v14 }
 0x14f   : > { %886 = vmatprep.subr.mxu0 %v1591_v15  ;;  %957 = vmatprep.subr.mxu1 %v1593_v16 }
 0x150   : > { %887 = vmatpush1.msra.mxu0 %v1597_v17  ;;  %958 = vmatpush1.msra.mxu1 %v1599_v18 }
 0x151   : > { %888 = vmatprep.subr.mxu0 %v1603_v19  ;;  %959 = vmatprep.subr.mxu1 %v1605_v20 }
 0x152   : > { %889 = vmatpush1.msra.mxu0 %v1609_v21  ;;  %960 = vmatpush1.msra.mxu1 %v1611_v22 }
 0x153   : > { %890 = vmatprep.subr.mxu0 %v1615_v23  ;;  %961 = vmatprep.subr.mxu1 %v1617_v24 }
 0x154   : > { %891 = vmatpush1.msra.mxu0 %v1621_v25  ;;  %962 = vmatpush1.msra.mxu1 %v1623_v26 }
 0x155   : > { %892 = vmatprep.subr.mxu0 %v1627_v27  ;;  %963 = vmatprep.subr.mxu1 %v1629_v28 }
 0x156   : > { %893 = vmatpush1.msra.mxu0 %v1633_v29  ;;  %964 = vmatpush1.msra.mxu1 %v1635_v30 }
 0x157   : > { %894 = vmatprep.subr.mxu0 %v1639_v31  ;;  %965 = vmatprep.subr.mxu1 %v1641_v32 }
 0x158   : > { %895 = vmatpush1.msra.mxu0 %v1645_v33  ;;  %966 = vmatpush1.msra.mxu1 %v1647_v34 }
 0x159   : > { %896 = vmatprep.subr.mxu0 %v1651_v35  ;;  %967 = vmatprep.subr.mxu1 %v1653_v36 }
 0x15a   : > { %897 = vmatpush1.msra.mxu0 %v1657_v37  ;;  %968 = vmatpush1.msra.mxu1 %v1659_v38 }
 0x15b   : > { %898 = vmatprep.subr.mxu0 %v1663_v39  ;;  %969 = vmatprep.subr.mxu1 %v1665_v40 }
 0x15c   : > { %899 = vmatpush1.msra.mxu0 %v1669_v41  ;;  %970 = vmatpush1.msra.mxu1 %v1673_v42 }
 0x15d   : > { %900 = vmatprep.subr.mxu0 %v1678_v44  ;;  %971 = vmatprep.subr.mxu1 %v1680_v45 }
 0x15e   : > { %901 = vmatpush1.msra.mxu0 %v1684_v46  ;;  %972 = vmatpush1.msra.mxu1 %v1688_v47 }
 0x15f   : > { %902 = vmatprep.subr.mxu0 %v2143_v48  ;;  %973 = vmatprep.subr.mxu1 %v2144_v51 }
 0x160   : > { %903 = vmatpush1.msra.mxu0 %v2145_v63  ;;  %974 = vmatpush1.msra.mxu1 %v2146_v8 }
 0x161   : > { %904 = vmatprep.subr.mxu0 %v2147_v58  ;;  %975 = vmatprep.subr.mxu1 %v2148_v55 }
 0x162   : > { %905 = vmatpush1.msra.mxu0 %v2149_v50  ;;  %976 = vmatpush1.msra.mxu1 %v2150_v5 }
 0x163   : > { %906 = vmatprep.subr.mxu0 %v2151_v4  ;;  %977 = vmatprep.subr.mxu1 %v2152_v61 }
 0x164   : > { %907 = vmatpush1.msra.mxu0 %v2153_v7  ;;  %978 = vmatpush1.msra.mxu1 %v2154_v52  ;;  %v2172_v52 = vld [vmem:[#allocation39_spill] sm:$0xff] }
 0x165   : > { %908 = vmatprep.subr.mxu0 %v2155_v53  ;;  %979 = vmatprep.subr.mxu1 %v2156_v54 }
 0x166   : > { %909 = vmatpush1.msra.mxu0 %v2157_v49  ;;  %980 = vmatpush1.msra.mxu1 %v2158_v0  ;;  %v2168_v0 = vld [vmem:[#allocation11_spill] sm:$0xff] }
 0x167   : > { %910 = vmatprep.subr.mxu0 %v2159_v56  ;;  %981 = vmatprep.subr.mxu1 %v2160_v60  ;;  %v2169_v56 = vld [vmem:[#allocation12_spill] sm:$0xff] }
 0x168   : > { %911 = vmatpush1.msra.mxu0 %v2161_v1  ;;  %982 = vmatpush1.msra.mxu1 %v2162_v2  ;;  %v2170_v1 = vld [vmem:[#allocation37_spill] sm:$0xff] }
 0x169   : > { %912 = vmatprep.subr.mxu0 %v2163_v59  ;;  %983 = vmatprep.subr.mxu1 %v2164_v43  ;;  %v2171_v59 = vld [vmem:[#allocation38_spill] sm:$0xff] }
 0x16a   : > { %913 = vmatpush1.msra.mxu0 %v2165_v57  ;;  %946 = vmatprep.mubr.f32.mxu0 %v2166_v62 }
 0x16b   : > { %984 = vmatpush1.msra.mxu1 %v2167_v3  ;;  %1017 = vmatprep.mubr.f32.mxu1 %v2166_v62  ;;  %v2173_v62 = vld [vmem:[#allocation41_spill] sm:$0xff] }
 0x16c   : > { %1059 = vmatprep.subr.mxu0 %v2168_v0  ;;  %1130 = vmatprep.subr.mxu1 %v2169_v56 }
 0x20b   : > { %v771_v60 = vpop.f32.mrf.mxu0  ;;  %v842_v57 = vpop.f32.mrf.mxu1 }
 0x20c   : > { %v847_v49 = vadd.f32 %v771_v60, %v2170_v1  ;;  %v849_v7 = vadd.f32 %v842_v57, %v2172_v52 }
 0x20d   : > { %v773_v2 = vpop.f32.mrf.mxu0  ;;  %v844_v3 = vpop.f32.mrf.mxu1 }
 0x20e   : > { %v1317_v54 = vmul.f32 -1.442695, %v847_v49  ;;  %v848_v53 = vadd.f32 %v773_v2, %v2171_v59  ;;  %v1319_v61 = vmul.f32 -1.442695, %v849_v7  ;;  %v850_v4 = vadd.f32 %v844_v3, %v2173_v62  ;;  %v2196_v3 = vld [vmem:[#allocation44_spill] sm:$0xff] }
 0x210   : > { %1378 = vpow2.f32 %v1317_v54  ;;  %v1318_v43 = vmul.f32 -1.442695, %v848_v53 }
 0x212   : > { %1380 = vpow2.f32 %v1318_v43 }
 0x213   : > { %1382 = vpow2.f32 %v1319_v61 }
 0x214   : > { %1384 = vtanh.f32 %v850_v4 }
 0x21d   : > { %v1379_v0 = vpop.eup %1378 }
 0x21e   : > { %v860_v5 = vadd.f32 1.0, %v1379_v0 }
 0x21f   : > { %v1381_v56 = vpop.eup %1380 }
 0x220   : > { %1386 = vrcp.f32 %v860_v5  ;;  %v861_v60 = vadd.f32 1.0, %v1381_v56  ;;  %v1383_v49 = vpop.eup %1382 }
 0x221   : > { %v1385_v1 = vpop.eup %1384  ;;  %v862_v59 = vadd.f32 1.0, %v1383_v49  ;;  %v2197_v49 = vld [vmem:[#allocation46_spill] sm:$0xff] }
 0x222   : > { %1388 = vrcp.f32 %v861_v60 }
 0x223   : > { %1390 = vrcp.f32 %v862_v59 }
 0x22d   : > { %v1387_v54 = vpop.eup %1386 }
 0x22e   : > { %v871_v53 = vmul.f32 %v1387_v54, %v1385_v1 }
 0x22f   : > { %v1389_v2 = vpop.eup %1388 }
 0x230   : > { %v870_v52 = vmul.f32 %v1389_v2, %v1875_v6  ;;  %v1391_v7 = vpop.eup %1390  ;;  %v2198_v2 = vld [vmem:[#allocation47_spill] sm:$0xff] }
 0x232   : > { %v1949_v43 = vadd.f32 %v871_v53, %v870_v52 }
 0x234   : > { %1392 = vtanh.f32 %v1949_v43 }
 0x241   : > { %v1393_v61 = vpop.eup %1392 }
 0x242   : > { %v874_v57 = vmul.f32 %v1393_v61, %v1391_v7  ;;  %v2199_v7 = vld [vmem:[#allocation48_spill] sm:$0xff] }
 0x244   : > { %947 = vmatmul.mubr.f32.vlgmr.msra.gmra.mxu0 %v874_v57  ;;  %1018 = vmatmul.mubr.f32.vlgmr.msra.gmra.mxu1 %v874_v57 }
 0x245   : > { %1060 = vmatpush1.msra.mxu0 %v1573_v9  ;;  %1131 = vmatpush1.msra.mxu1 %v1575_v10  ;;  %v2174_v9 = vld [vmem:[#allocation20_spill] sm:$0xff]  ;;  %v2175_v10 = vld [vmem:[#allocation21_spill] sm:$0xff] }
 0x246   : > { %1061 = vmatprep.subr.mxu0 %v1579_v11  ;;  %1132 = vmatprep.subr.mxu1 %v1581_v12  ;;  %v2176_v11 = vld [vmem:[#allocation22_spill] sm:$0xff]  ;;  %v2177_v12 = vld [vmem:[#allocation23_spill] sm:$0xff] }
 0x247   : > { %1062 = vmatpush1.msra.mxu0 %v1585_v13  ;;  %1133 = vmatpush1.msra.mxu1 %v1587_v14  ;;  %v2178_v13 = vld [vmem:[#allocation24_spill] sm:$0xff]  ;;  %v2179_v14 = vld [vmem:[#allocation25_spill] sm:$0xff] }
 0x248   : > { %1063 = vmatprep.subr.mxu0 %v1591_v15  ;;  %1134 = vmatprep.subr.mxu1 %v1593_v16  ;;  %v2180_v15 = vld [vmem:[#allocation26_spill] sm:$0xff]  ;;  %v2181_v16 = vld [vmem:[#allocation27_spill] sm:$0xff] }
 0x249   : > { %1064 = vmatpush1.msra.mxu0 %v1597_v17  ;;  %1135 = vmatpush1.msra.mxu1 %v1599_v18  ;;  %v2182_v17 = vld [vmem:[#allocation28_spill] sm:$0xff]  ;;  %v2183_v18 = vld [vmem:[#allocation29_spill] sm:$0xff] }
 0x24a   : > { %1065 = vmatprep.subr.mxu0 %v1603_v19  ;;  %1136 = vmatprep.subr.mxu1 %v1605_v20  ;;  %v2184_v19 = vld [vmem:[#allocation30_spill] sm:$0xff]  ;;  %v2185_v20 = vld [vmem:[#allocation31_spill] sm:$0xff] }
 0x24b   : > { %1066 = vmatpush1.msra.mxu0 %v1609_v21  ;;  %1137 = vmatpush1.msra.mxu1 %v1611_v22  ;;  %v2186_v21 = vld [vmem:[#allocation32_spill] sm:$0xff]  ;;  %v2187_v22 = vld [vmem:[#allocation33_spill] sm:$0xff] }
 0x24c   : > { %1067 = vmatprep.subr.mxu0 %v1615_v23  ;;  %1138 = vmatprep.subr.mxu1 %v1617_v24  ;;  %v2188_v23 = vld [vmem:[#allocation34_spill] sm:$0xff]  ;;  %v2189_v24 = vld [vmem:[#allocation35_spill] sm:$0xff] }
 0x24d   : > { %1068 = vmatpush1.msra.mxu0 %v1621_v25  ;;  %1139 = vmatpush1.msra.mxu1 %v1623_v26  ;;  %v2190_v25 = vmov 0.0   ;;  %v2191_v26 = vld [vmem:[#allocation36_spill] sm:$0xff] }
 0x24e   : > { %1069 = vmatprep.subr.mxu0 %v1627_v27  ;;  %1140 = vmatprep.subr.mxu1 %v1629_v28  ;;  %v2192_v28 = vld [vmem:[#allocation40_spill] sm:$0xff] }
 0x24f   : > { %1070 = vmatpush1.msra.mxu0 %v1633_v29  ;;  %1141 = vmatpush1.msra.mxu1 %v1635_v30 }
 0x250   : > { %1071 = vmatprep.subr.mxu0 %v1639_v31  ;;  %1142 = vmatprep.subr.mxu1 %v1641_v32  ;;  %v2193_v32 = vld [vmem:[#allocation42_spill] sm:$0xff] }
 0x251   : > { %1072 = vmatpush1.msra.mxu0 %v1645_v33  ;;  %1143 = vmatpush1.msra.mxu1 %v1647_v34 }
 0x252   : > { %1073 = vmatprep.subr.mxu0 %v1651_v35  ;;  %1144 = vmatprep.subr.mxu1 %v1653_v36  ;;  %v2194_v36 = vld [vmem:[#allocation43_spill] sm:$0xff] }
 0x253   : > { %1074 = vmatpush1.msra.mxu0 %v1657_v37  ;;  %1145 = vmatpush1.msra.mxu1 %v1659_v38 }
 0x254   : > { %1075 = vmatprep.subr.mxu0 %v1663_v39  ;;  %1146 = vmatprep.subr.mxu1 %v1665_v40  ;;  %v2195_v40 = vld [vmem:[#allocation45_spill] sm:$0xff] }
 0x255   : > { %1076 = vmatpush1.msra.mxu0 %v1669_v41  ;;  %1147 = vmatpush1.msra.mxu1 %v1673_v42 }
 0x256   : > { %1077 = vmatprep.subr.mxu0 %v1678_v44  ;;  %1148 = vmatprep.subr.mxu1 %v1680_v45 }
 0x257   : > { %1078 = vmatpush1.msra.mxu0 %v1684_v46  ;;  %1149 = vmatpush1.msra.mxu1 %v1688_v47 }
 0x258   : > { %1079 = vmatprep.subr.mxu0 %v2143_v48  ;;  %1150 = vmatprep.subr.mxu1 %v2144_v51 }
 0x259   : > { %1080 = vmatpush1.msra.mxu0 %v2145_v63  ;;  %1151 = vmatpush1.msra.mxu1 %v2146_v8 }
 0x25a   : > { %1081 = vmatprep.subr.mxu0 %v2147_v58  ;;  %1152 = vmatprep.subr.mxu1 %v2148_v55 }
 0x25b   : > { %1082 = vmatpush1.msra.mxu0 %v2149_v50  ;;  %1153 = vmatpush1.msra.mxu1 %v2174_v9 }
 0x25c   : > { %1083 = vmatprep.subr.mxu0 %v2175_v10  ;;  %1154 = vmatprep.subr.mxu1 %v2176_v11 }
 0x25d   : > { %1084 = vmatpush1.msra.mxu0 %v2177_v12  ;;  %1155 = vmatpush1.msra.mxu1 %v2178_v13 }
 0x25e   : > { %1085 = vmatprep.subr.mxu0 %v2179_v14  ;;  %1156 = vmatprep.subr.mxu1 %v2180_v15 }
 0x25f   : > { %1086 = vmatpush1.msra.mxu0 %v2181_v16  ;;  %1157 = vmatpush1.msra.mxu1 %v2182_v17 }
 0x260   : > { %1087 = vmatprep.subr.mxu0 %v2183_v18  ;;  %1158 = vmatprep.subr.mxu1 %v2184_v19 }
 0x261   : > { %1088 = vmatpush1.msra.mxu0 %v2185_v20  ;;  %1159 = vmatpush1.msra.mxu1 %v2186_v21 }
 0x262   : > { %1089 = vmatprep.subr.mxu0 %v2187_v22  ;;  %1160 = vmatprep.subr.mxu1 %v2188_v23 }
 0x263   : > { %1090 = vmatpush1.msra.mxu0 %v2189_v24  ;;  %1123 = vmatprep.mubr.f32.mxu0 %v2190_v25 }
 0x264   : > { %1161 = vmatpush1.msra.mxu1 %v2191_v26  ;;  %1194 = vmatprep.mubr.f32.mxu1 %v2190_v25 }
 0x304   : > { %v948_v27 = vpop.f32.mrf.mxu0  ;;  %v1019_v35 = vpop.f32.mrf.mxu1 }
 0x305   : > { %v1024_v29 = vadd.f32 %v948_v27, %v2192_v28  ;;  %v1026_v37 = vadd.f32 %v1019_v35, %v2194_v36 }
 0x306   : > { %v950_v30 = vpop.f32.mrf.mxu0  ;;  %v1021_v38 = vpop.f32.mrf.mxu1 }
 0x307   : > { %v1320_v31 = vmul.f32 -1.442695, %v1024_v29  ;;  %v1025_v33 = vadd.f32 %v950_v30, %v2193_v32  ;;  %v1322_v39 = vmul.f32 -1.442695, %v1026_v37  ;;  %v1027_v41 = vadd.f32 %v1021_v38, %v2195_v40 }
 0x309   : > { %1394 = vpow2.f32 %v1320_v31  ;;  %v1321_v34 = vmul.f32 -1.442695, %v1025_v33 }
 0x30b   : > { %1396 = vpow2.f32 %v1321_v34 }
 0x30c   : > { %1398 = vpow2.f32 %v1322_v39 }
 0x30d   : > { %1400 = vtanh.f32 %v1027_v41 }
 0x316   : > { %v1395_v42 = vpop.eup %1394 }
 0x317   : > { %v1037_v44 = vadd.f32 1.0, %v1395_v42 }
 0x318   : > { %v1397_v45 = vpop.eup %1396 }
 0x319   : > { %1402 = vrcp.f32 %v1037_v44  ;;  %v1038_v46 = vadd.f32 1.0, %v1397_v45  ;;  %v1399_v47 = vpop.eup %1398 }
 0x31a   : > { %v1401_v6 = vpop.eup %1400  ;;  %v1039_v8 = vadd.f32 1.0, %v1399_v47 }
 0x31b   : > { %1404 = vrcp.f32 %v1038_v46 }
 0x31c   : > { %1406 = vrcp.f32 %v1039_v8 }
 0x326   : > { %v1403_v48 = vpop.eup %1402 }
 0x327   : > { %v1048_v51 = vmul.f32 %v1403_v48, %v1401_v6 }
 0x328   : > { %v1405_v63 = vpop.eup %1404 }
 0x329   : > { %v1047_v58 = vmul.f32 %v1405_v63, %v1949_v43  ;;  %v1407_v50 = vpop.eup %1406 }
 0x32b   : > { %v1049_v55 = vadd.f32 %v1048_v51, %v1047_v58 }
 0x32d   : > { %1408 = vtanh.f32 %v1049_v55 }
 0x33a   : > { %v1409_v5 = vpop.eup %1408 }
 0x33b   : > { %v1051_v4 = vmul.f32 %v1409_v5, %v1407_v50 }
 0x33d   : > { %1124 = vmatmul.mubr.f32.vlgmr.msra.gmra.mxu0 %v1051_v4  ;;  %1195 = vmatmul.mubr.f32.vlgmr.msra.gmra.mxu1 %v1051_v4 }
 0x3fd   : > { %v1125_v62 = vpop.f32.mrf.mxu0  ;;  %v1196_v53 = vpop.f32.mrf.mxu1 }
 0x3fe   : > { %v1201_v0 = vadd.f32 %v1125_v62, %v2196_v3  ;;  %v1203_v59 = vadd.f32 %v1196_v53, %v2198_v2 }
 0x3ff   : > { %v1127_v56 = vpop.f32.mrf.mxu0  ;;  %v1198_v52 = vpop.f32.mrf.mxu1 }
 0x400   : > { %v1323_v60 = vmul.f32 -1.442695, %v1201_v0  ;;  %v1202_v1 = vadd.f32 %v1127_v56, %v2197_v49  ;;  %v1325_v43 = vmul.f32 -1.442695, %v1203_v59  ;;  %v1204_v61 = vadd.f32 %v1198_v52, %v2199_v7 }
 0x402   : > { %1410 = vpow2.f32 %v1323_v60  ;;  %v1324_v54 = vmul.f32 -1.442695, %v1202_v1 }
 0x404   : > { %1412 = vpow2.f32 %v1324_v54 }
 0x405   : > { %1414 = vpow2.f32 %v1325_v43 }
 0x406   : > { %1416 = vtanh.f32 %v1204_v61 }
 0x40f   : > { %v1411_v57 = vpop.eup %1410 }
 0x410   : > { %v1214_v9 = vadd.f32 1.0, %v1411_v57 }
 0x411   : > { %v1413_v10 = vpop.eup %1412 }
 0x412   : > { %1418 = vrcp.f32 %v1214_v9  ;;  %v1215_v11 = vadd.f32 1.0, %v1413_v10  ;;  %v1415_v12 = vpop.eup %1414 }
 0x413   : > { %v1417_v13 = vpop.eup %1416  ;;  %v1216_v17 = vadd.f32 1.0, %v1415_v12 }
 0x414   : > { %1420 = vrcp.f32 %v1215_v11 }
 0x415   : > { %1422 = vrcp.f32 %v1216_v17 }
 0x41f   : > { %v1419_v14 = vpop.eup %1418 }
 0x420   : > { %v1225_v15 = vmul.f32 %v1419_v14, %v1417_v13 }
 0x421   : > { %v1421_v16 = vpop.eup %1420 }
 0x422   : > { %v1224_v18 = vmul.f32 %v1421_v16, %v1049_v55  ;;  %v1423_v20 = vpop.eup %1422 }
 0x424   : > { %v1226_v19 = vadd.f32 %v1225_v15, %v1224_v18 }
 0x426   : > { %1230 = vst [vmem:[#allocation3] sm:$0xff] %v1226_v19  ;;  %1424 = vtanh.f32 %v1226_v19 }
 0x433   : > { %v1425_v21 = vpop.eup %1424 }
 0x434   : > { %v1228_v22 = vmul.f32 %v1425_v21, %v1423_v20 }
 0x436   : > { %1229 = vst [vmem:[#allocation2] sm:$0xff] %v1228_v22  ;;  %1231 = vst [vmem:[#allocation8] sm:$0xff] %v1228_v22 }
 0x437   : > { %1465 = shalt.err (!%p1462_p9)
}
 0x438   : > { %1335 = dma.vmem_to_hbm [thread:$0]  (%p1344_p2), %s1240_s11, 128, %s2044_s4, [#allocation7]  }
 0x439   : > { %1485 = dma.done.wait (%p1344_p2), [#allocation7], 128  }
 0x43a   : > { %1487 = vsyncadd (%p1344_p2), [#allocation7], 4294967168 }
 0x43b PF: > { %s16_s15 = sadd.s32 1, %s1490_s15  }
 0x43c   : > { %p13_p10 = scmp.ge.s32.totalorder %s16_s15, 4  }
 0x43e   :  { %15 = sbr.rel (!%p13_p10) target bundleno = 2 (0x2), region = 76 }
 0x443   :  { %1252 = vsyncpa [#allocation6], 1 }
 0x444   :  { %1254 = vsyncpa [#allocation6 + $0x1], 1 }
 0x445   :  { %1255 = vsyncpa [#allocation7], 1 }
 0x446   :  { %1257 = vsyncpa [#allocation7 + $0x1], 1 }

</bundles_post_ra>
